<compile_context>
chip_gen: v7x
topology: tpu7x:2x2x1
jax: 0.10.0
libtpu: 0.0.40
codegen_flags: <defaults>
</compile_context>

<pallas_src>
import math

import jax
import jax.numpy as jnp
from jax import lax
from jax.experimental import pallas as pl
from jax.experimental.pallas import tpu as pltpu

N_LAYER = 3
LN_EPS = 1e-5                      # PyTorch nn.LayerNorm default eps
MATMUL_DTYPE = jnp.bfloat16        # MXU-native operand dtype (f32 accumulate)


def _round_up(a, m):
    return ((a + m - 1) // m) * m


def _gelu_exact(x):
    # nn.GELU() default is the exact (erf-based) GELU.
    return 0.5 * x * (1.0 + lax.erf(x / math.sqrt(2.0)))


def image_encoder_kernel(
    x_ref, eps_ref,
    stem_w_ref, blk_w_ref, head_w_ref, rows_ref,
    out_ref,
    h_acc,
):
    k = pl.program_id(1)

    @pl.when(k == 0)
    def _init():
        h_acc[...] = jnp.zeros_like(h_acc)

    # K-tiled stem partial product: bf16 operands, f32 accumulation in VMEM.
    h_acc[...] += jnp.dot(
        x_ref[...].astype(MATMUL_DTYPE), stem_w_ref[...],
        preferred_element_type=jnp.float32)

    @pl.when(k == pl.num_programs(1) - 1)
    def _finish():
        bm, dim = h_acc.shape
        z_dim = eps_ref.shape[-1]

        # Packed (8, W) slab: row0=stem_b, row1=ln_w, row2=ln_b, row3=blk_b,
        # row4=[mu_b || lv_b]; rows 5..7 are padding.
        rows = rows_ref[...]
        stem_b = rows[0:1, :dim]
        # Hoist the (1, dim) -> (bm, dim) broadcasts out of the unrolled loop.
        ln_w = jnp.broadcast_to(rows[1:2, :dim], (bm, dim))
        ln_b = jnp.broadcast_to(rows[2:3, :dim], (bm, dim))
        blk_b = jnp.broadcast_to(rows[3:4, :dim], (bm, dim))
        head_b = rows[4:5, :2 * z_dim]

        h = h_acc[...] + stem_b
        blk_w = blk_w_ref[...]

        # 3 residual blocks with SHARED parameters: h = h + GELU(Linear(LN(h)))
        for _ in range(N_LAYER):
            mean = jnp.mean(h, axis=-1, keepdims=True)
            xc = h - mean
            var = jnp.mean(xc * xc, axis=-1, keepdims=True)     # centered form
            hn = xc * lax.rsqrt(var + LN_EPS) * ln_w + ln_b
            y = jnp.dot(hn.astype(MATMUL_DTYPE), blk_w,
                        preferred_element_type=jnp.float32) + blk_b
            h = h + _gelu_exact(y)

        # Fused heads: one 2*z_dim-wide f32 matmul producing [mu || log_var]
        # (kept f32 because it feeds exp(0.5*log_var)).
        head = jnp.dot(h, head_w_ref[...],
                       preferred_element_type=jnp.float32) + head_b
        mu = head[:, :z_dim]
        lv = head[:, z_dim:]

        # Reparameterization: z = eps * exp(0.5 * log_var) + mu
        # (eps ~ U[0,1) generated outside the kernel, matching torch.rand_like)
        z = eps_ref[...] * jnp.exp(0.5 * lv) + mu

        # Two direct stores in [mu || lv || z] order: lane-aligned 128-wide
        # store of the packed head + one 64-wide masked store of z.  No concat,
        # no cross-lane relayout.
        out_ref[:, :2 * z_dim] = head.astype(out_ref.dtype)
        out_ref[:, 2 * z_dim:] = z.astype(out_ref.dtype)


def image_encoder_forward(x, eps, params, *, block_batch=512, max_tk=1024):
    B, in_features = x.shape
    dim = params["stem_w"].shape[1]
    z_dim = params["mu_w"].shape[1]

    # ---- pack / cast weights once in the wrapper ----
    stem_w = params["stem_w"].astype(MATMUL_DTYPE)
    blk_w = params["blk_w"].astype(MATMUL_DTYPE)
    head_w = jnp.concatenate([params["mu_w"], params["lv_w"]], axis=1)   # f32

    # All (1, feat) bias / LN rows packed into one (8, W) slab -> single DMA.
    W = _round_up(max(dim, 2 * z_dim), 128)

    def _pad_row(r):
        return jnp.pad(r.astype(jnp.float32), ((0, 0), (0, W - r.shape[1])))

    rows = jnp.concatenate(
        [
            _pad_row(params["stem_b"]),
            _pad_row(params["ln_w"]),
            _pad_row(params["ln_b"]),
            _pad_row(params["blk_b"]),
            _pad_row(jnp.concatenate([params["mu_b"], params["lv_b"]], axis=1)),
            jnp.zeros((3, W), jnp.float32),
        ],
        axis=0,
    )

    # ---- batch tile: multiple of 16 (bf16 LHS sublane packing); when B is
    # large make the "parallel" axis span >= 2 grid steps (v7x: 2 TCs) ----
    bm = min(block_batch, _round_up(pl.cdiv(B, 2), 16), _round_up(B, 8))
    bm = max(bm, 8)
    num_b = pl.cdiv(B, bm)

    # ---- K-tiling of the stem reduction (zero-pad so tiles divide evenly) ----
    if in_features <= max_tk:
        tk = in_features
    else:
        tk = max_tk                                   # multiple of 128
        kp = _round_up(in_features, tk)
        if kp != in_features:
            x = jnp.pad(x, ((0, 0), (0, kp - in_features)))
            stem_w = jnp.pad(stem_w, ((0, kp - in_features), (0, 0)))
        in_features = kp
    num_k = in_features // tk

    grid = (num_b, num_k)

    in_specs = [
        pl.BlockSpec((bm, tk), lambda i, k: (i, k)),              # x
        pl.BlockSpec((bm, z_dim), lambda i, k: (i, 0)),           # eps
        pl.BlockSpec((tk, dim), lambda i, k: (k, 0)),             # stem_w
        pl.BlockSpec((dim, dim), lambda i, k: (0, 0)),            # blk_w
        pl.BlockSpec((dim, 2 * z_dim), lambda i, k: (0, 0)),      # head_w
        pl.BlockSpec((8, W), lambda i, k: (0, 0)),                # packed rows
    ]
    out_specs = pl.BlockSpec((bm, 3 * z_dim), lambda i, k: (i, 0))
    out_shape = jax.ShapeDtypeStruct((B, 3 * z_dim), jnp.float32)

    # ---- right-size the VMEM request from actual buffer need (+headroom) ----
    def _isize(a):
        return jnp.dtype(a.dtype).itemsize

    vmem_need = (
        2 * bm * tk * _isize(x)                 # x tiles (double-buffered)
        + 2 * tk * dim * _isize(stem_w)         # stem_w tiles
        + 2 * bm * z_dim * 4                    # eps tiles
        + 2 * dim * dim * _isize(blk_w)         # blk_w
        + 2 * dim * 2 * z_dim * 4               # head_w (f32)
        + 2 * 8 * W * 4                         # packed rows
        + 2 * bm * 3 * z_dim * 4                # output tile
        + bm * dim * 4                          # h accumulator scratch
    )
    vmem_limit = int(min(max(2 * vmem_need + (2 << 20), 8 << 20), 48 << 20))

    out = pl.pallas_call(
        image_encoder_kernel,
        grid=grid,
        in_specs=in_specs,
        out_specs=out_specs,
        out_shape=out_shape,
        scratch_shapes=[pltpu.VMEM((bm, dim), jnp.float32)],
        compiler_params=pltpu.CompilerParams(
            dimension_semantics=("parallel", "arbitrary"),
            vmem_limit_bytes=vmem_limit,
        ),
    )(x, eps, stem_w, blk_w, head_w, rows)

    mu = out[:, :z_dim]
    lv = out[:, z_dim:2 * z_dim]
    z = out[:, 2 * z_dim:]
    return z, mu, lv


def init_params(key, in_features, dim, z_dim):
    ks = jax.random.split(key, 8)
    scale = 0.02
    return {
        "stem_w": scale * jax.random.normal(ks[0], (in_features, dim), jnp.float32),
        "stem_b": scale * jax.random.normal(ks[1], (1, dim), jnp.float32),
        "ln_w": jnp.ones((1, dim), jnp.float32),
        "ln_b": jnp.zeros((1, dim), jnp.float32),
        "blk_w": scale * jax.random.normal(ks[2], (dim, dim), jnp.float32),
        "blk_b": scale * jax.random.normal(ks[3], (1, dim), jnp.float32),
        "mu_w": scale * jax.random.normal(ks[4], (dim, z_dim), jnp.float32),
        "mu_b": scale * jax.random.normal(ks[5], (1, z_dim), jnp.float32),
        "lv_w": scale * jax.random.normal(ks[6], (dim, z_dim), jnp.float32),
        "lv_b": scale * jax.random.normal(ks[7], (1, z_dim), jnp.float32),
    }


def reference_forward(x, eps, p):
    # pure-JAX f32 reference matching the PyTorch module semantics
    h = x @ p["stem_w"] + p["stem_b"]
    for _ in range(N_LAYER):
        mean = jnp.mean(h, axis=-1, keepdims=True)
        var = jnp.mean((h - mean) ** 2, axis=-1, keepdims=True)
        hn = (h - mean) / jnp.sqrt(var + LN_EPS) * p["ln_w"] + p["ln_b"]
        y = hn @ p["blk_w"] + p["blk_b"]
        h = h + 0.5 * y * (1.0 + lax.erf(y / math.sqrt(2.0)))
    mu = h @ p["mu_w"] + p["mu_b"]
    lv = h @ p["lv_w"] + p["lv_b"]
    z = eps * jnp.exp(0.5 * lv) + mu
    return z, mu, lv


if __name__ == "__main__":
    # module defaults (in_features=784, z_dim=64, dim=128), small batch
    B, IN_FEATURES, DIM, Z_DIM = 8, 784, 128, 64

    key = jax.random.PRNGKey(0)
    k_x, k_eps, k_p = jax.random.split(key, 3)

    x = jax.random.normal(k_x, (B, IN_FEATURES), jnp.float32)
    eps = jax.random.uniform(k_eps, (B, Z_DIM), jnp.float32)  # torch.rand_like -> U[0,1)
    params = init_params(k_p, IN_FEATURES, DIM, Z_DIM)

    z_ref, mu_ref, lv_ref = reference_forward(x, eps, params)

    # path 1: single K tile (in_features <= max_tk)
    z, mu, lv = image_encoder_forward(x, eps, params)
    jax.block_until_ready((z, mu, lv))
    assert jnp.allclose(mu, mu_ref, atol=2e-2, rtol=2e-2)
    assert jnp.allclose(lv, lv_ref, atol=2e-2, rtol=2e-2)
    assert jnp.allclose(z, z_ref, atol=2e-2, rtol=2e-2)

    # path 2: K-tiled stem (forces num_k > 1, exercises zero-padding + acc)
    z2, mu2, lv2 = image_encoder_forward(x, eps, params, max_tk=256)
    jax.block_until_ready((z2, mu2, lv2))
    assert jnp.allclose(mu2, mu_ref, atol=2e-2, rtol=2e-2)
    assert jnp.allclose(lv2, lv_ref, atol=2e-2, rtol=2e-2)
    assert jnp.allclose(z2, z_ref, atol=2e-2, rtol=2e-2)

    print("KERNEL_OK")
</pallas_src>

<mosaic_0001>
module attributes {stable_mosaic.version = 11 : i64} {
  func.func @image_encoder_kernel(%arg0: i32, %arg1: i32, %arg2: memref<8x784xf32, #tpu.memory_space<vmem>>, %arg3: memref<8x64xf32, #tpu.memory_space<vmem>>, %arg4: memref<784x128xbf16, #tpu.memory_space<vmem>>, %arg5: memref<128x128xbf16, #tpu.memory_space<vmem>>, %arg6: memref<128x128xf32, #tpu.memory_space<vmem>>, %arg7: memref<8x128xf32, #tpu.memory_space<vmem>>, %arg8: memref<8x192xf32, #tpu.memory_space<vmem>>, %arg9: memref<8x128xf32, #tpu.memory_space<vmem>>) attributes {dimension_semantics = [#tpu.dimension_semantics<parallel>, #tpu.dimension_semantics<arbitrary>], iteration_bounds = array<i64: 1, 1>, scalar_prefetch = 0 : i64, scratch_operands = 1 : i64, tpu.core_type = #tpu.core_type<tc>, window_params = [{transform_indices = @transform_0, window_bounds = array<i64: 8, 784>}, {transform_indices = @transform_1, window_bounds = array<i64: 8, 64>}, {transform_indices = @transform_2, window_bounds = array<i64: 784, 128>}, {pipeline_mode = #tpu.pipeline_mode<synchronous>, transform_indices = @transform_3, window_bounds = array<i64: 128, 128>}, {pipeline_mode = #tpu.pipeline_mode<synchronous>, transform_indices = @transform_4, window_bounds = array<i64: 128, 128>}, {pipeline_mode = #tpu.pipeline_mode<synchronous>, transform_indices = @transform_5, window_bounds = array<i64: 8, 128>}, {transform_indices = @transform_6, window_bounds = array<i64: 8, 192>}]} {
    %c0_i32 = arith.constant 0 : i32
    %0 = arith.cmpi eq, %arg1, %c0_i32 : i32
    %1 = arith.extui %0 : i1 to i32
    %c0_i32_0 = arith.constant 0 : i32
    %2 = arith.cmpi ne, %1, %c0_i32_0 : i32
    scf.if %2 {
      %cst_10 = arith.constant 0.000000e+00 : f32
      %13 = vector.broadcast %cst_10 : f32 to vector<8x128xf32>
      %c0_11 = arith.constant 0 : index
      %c0_12 = arith.constant 0 : index
      %14 = vector.load %arg9[%c0_11, %c0_12] : memref<8x128xf32, #tpu.memory_space<vmem>>, vector<8x128xf32>
      tpu.vector_store %arg9[%c0_11, %c0_12], %13 {strides = array<i32>} : memref<8x128xf32, #tpu.memory_space<vmem>>, vector<8x128xf32>,
    } else {
    }
    %c0 = arith.constant 0 : index
    %c0_1 = arith.constant 0 : index
    %3 = vector.load %arg9[%c0, %c0_1] : memref<8x128xf32, #tpu.memory_space<vmem>>, vector<8x128xf32>
    %c0_2 = arith.constant 0 : index
    %c0_3 = arith.constant 0 : index
    %4 = vector.load %arg2[%c0_2, %c0_3] : memref<8x784xf32, #tpu.memory_space<vmem>>, vector<8x784xf32>
    %5 = arith.truncf %4 : vector<8x784xf32> to vector<8x784xbf16>
    %c0_4 = arith.constant 0 : index
    %c0_5 = arith.constant 0 : index
    %6 = vector.load %arg4[%c0_4, %c0_5] : memref<784x128xbf16, #tpu.memory_space<vmem>>, vector<784x128xbf16>
    %cst = arith.constant dense<0.000000e+00> : vector<8x128xf32>
    %7 = tpu.matmul %5, %6, %cst {dimension_numbers = #tpu.dot_dimension_numbers<[1], [0], [0], [1], [0, 0, 1, 1], [], []>} : vector<8x784xbf16>, vector<784x128xbf16>, vector<8x128xf32> -> vector<8x128xf32>
    %8 = arith.addf %3, %7 : vector<8x128xf32>
    %c0_6 = arith.constant 0 : index
    %c0_7 = arith.constant 0 : index
    %9 = vector.load %arg9[%c0_6, %c0_7] : memref<8x128xf32, #tpu.memory_space<vmem>>, vector<8x128xf32>
    tpu.vector_store %arg9[%c0_6, %c0_7], %8 {strides = array<i32>} : memref<8x128xf32, #tpu.memory_space<vmem>>, vector<8x128xf32>,
    %c0_i32_8 = arith.constant 0 : i32
    %10 = arith.cmpi eq, %arg1, %c0_i32_8 : i32
    %11 = arith.extui %10 : i1 to i32
    %c0_i32_9 = arith.constant 0 : i32
    %12 = arith.cmpi ne, %11, %c0_i32_9 : i32
    scf.if %12 {
      %c0_10 = arith.constant 0 : index
      %c0_11 = arith.constant 0 : index
      %13 = vector.load %arg7[%c0_10, %c0_11] : memref<8x128xf32, #tpu.memory_space<vmem>>, vector<8x128xf32>
      %14 = vector.extract_strided_slice %13 {offsets = [0, 0], sizes = [1, 128], strides = [1, 1]} : vector<8x128xf32> to vector<1x128xf32>
      %15 = vector.extract_strided_slice %13 {offsets = [1, 0], sizes = [1, 128], strides = [1, 1]} : vector<8x128xf32> to vector<1x128xf32>
      %16 = vector.shape_cast %15 : vector<1x128xf32> to vector<1x128xf32>
      %17 = vector.broadcast %16 : vector<1x128xf32> to vector<8x128xf32>
      %18 = vector.extract_strided_slice %13 {offsets = [2, 0], sizes = [1, 128], strides = [1, 1]} : vector<8x128xf32> to vector<1x128xf32>
      %19 = vector.shape_cast %18 : vector<1x128xf32> to vector<1x128xf32>
      %20 = vector.broadcast %19 : vector<1x128xf32> to vector<8x128xf32>
      %21 = vector.extract_strided_slice %13 {offsets = [3, 0], sizes = [1, 128], strides = [1, 1]} : vector<8x128xf32> to vector<1x128xf32>
      %22 = vector.shape_cast %21 : vector<1x128xf32> to vector<1x128xf32>
      %23 = vector.broadcast %22 : vector<1x128xf32> to vector<8x128xf32>
      %24 = vector.extract_strided_slice %13 {offsets = [4, 0], sizes = [1, 128], strides = [1, 1]} : vector<8x128xf32> to vector<1x128xf32>
      %c0_12 = arith.constant 0 : index
      %c0_13 = arith.constant 0 : index
      %25 = vector.load %arg9[%c0_12, %c0_13] : memref<8x128xf32, #tpu.memory_space<vmem>>, vector<8x128xf32>
      %26 = vector.broadcast %14 : vector<1x128xf32> to vector<8x128xf32>
      %27 = arith.addf %25, %26 : vector<8x128xf32>
      %c0_14 = arith.constant 0 : index
      %c0_15 = arith.constant 0 : index
      %28 = vector.load %arg5[%c0_14, %c0_15] : memref<128x128xbf16, #tpu.memory_space<vmem>>, vector<128x128xbf16>
      %cst_16 = arith.constant dense<0.000000e+00> : vector<8xf32>
      %29 = vector.multi_reduction <add>, %27, %cst_16 [1] : vector<8x128xf32> to vector<8xf32>
      %30 = vector.shape_cast %29 : vector<8xf32> to vector<8x1xf32>
      %cst_17 = arith.constant 1.280000e+02 : f32
      %31 = vector.broadcast %cst_17 : f32 to vector<8x1xf32>
      %32 = arith.divf %30, %31 : vector<8x1xf32>
      %33 = vector.broadcast %32 : vector<8x1xf32> to vector<8x128xf32>
      %34 = arith.subf %27, %33 : vector<8x128xf32>
      %35 = arith.mulf %34, %34 : vector<8x128xf32>
      %cst_18 = arith.constant dense<0.000000e+00> : vector<8xf32>
      %36 = vector.multi_reduction <add>, %35, %cst_18 [1] : vector<8x128xf32> to vector<8xf32>
      %37 = vector.shape_cast %36 : vector<8xf32> to vector<8x1xf32>
      %cst_19 = arith.constant 1.280000e+02 : f32
      %38 = vector.broadcast %cst_19 : f32 to vector<8x1xf32>
      %39 = arith.divf %37, %38 : vector<8x1xf32>
      %cst_20 = arith.constant 9.99999974E-6 : f32
      %40 = vector.broadcast %cst_20 : f32 to vector<8x1xf32>
      %41 = arith.addf %39, %40 : vector<8x1xf32>
      %42 = math.rsqrt %41 : vector<8x1xf32>
      %43 = vector.broadcast %42 : vector<8x1xf32> to vector<8x128xf32>
      %44 = arith.mulf %34, %43 : vector<8x128xf32>
      %45 = arith.mulf %44, %17 : vector<8x128xf32>
      %46 = arith.addf %45, %20 : vector<8x128xf32>
      %47 = arith.truncf %46 : vector<8x128xf32> to vector<8x128xbf16>
      %cst_21 = arith.constant dense<0.000000e+00> : vector<8x128xf32>
      %48 = tpu.matmul %47, %28, %cst_21 {dimension_numbers = #tpu.dot_dimension_numbers<[1], [0], [0], [1], [0, 0, 1, 1], [], []>} : vector<8x128xbf16>, vector<128x128xbf16>, vector<8x128xf32> -> vector<8x128xf32>
      %49 = arith.addf %48, %23 : vector<8x128xf32>
      %cst_22 = arith.constant 5.000000e-01 : f32
      %50 = vector.broadcast %cst_22 : f32 to vector<8x128xf32>
      %51 = arith.mulf %50, %49 : vector<8x128xf32>
      %cst_23 = arith.constant 1.41421354 : f32
      %52 = vector.broadcast %cst_23 : f32 to vector<8x128xf32>
      %53 = arith.divf %49, %52 : vector<8x128xf32>
      %54 = math.erf %53 : vector<8x128xf32>
      %cst_24 = arith.constant 1.000000e+00 : f32
      %55 = vector.broadcast %cst_24 : f32 to vector<8x128xf32>
      %56 = arith.addf %55, %54 : vector<8x128xf32>
      %57 = arith.mulf %51, %56 : vector<8x128xf32>
      %58 = arith.addf %27, %57 : vector<8x128xf32>
      %cst_25 = arith.constant dense<0.000000e+00> : vector<8xf32>
      %59 = vector.multi_reduction <add>, %58, %cst_25 [1] : vector<8x128xf32> to vector<8xf32>
      %60 = vector.shape_cast %59 : vector<8xf32> to vector<8x1xf32>
      %cst_26 = arith.constant 1.280000e+02 : f32
      %61 = vector.broadcast %cst_26 : f32 to vector<8x1xf32>
      %62 = arith.divf %60, %61 : vector<8x1xf32>
      %63 = vector.broadcast %62 : vector<8x1xf32> to vector<8x128xf32>
      %64 = arith.subf %58, %63 : vector<8x128xf32>
      %65 = arith.mulf %64, %64 : vector<8x128xf32>
      %cst_27 = arith.constant dense<0.000000e+00> : vector<8xf32>
      %66 = vector.multi_reduction <add>, %65, %cst_27 [1] : vector<8x128xf32> to vector<8xf32>
      %67 = vector.shape_cast %66 : vector<8xf32> to vector<8x1xf32>
      %cst_28 = arith.constant 1.280000e+02 : f32
      %68 = vector.broadcast %cst_28 : f32 to vector<8x1xf32>
      %69 = arith.divf %67, %68 : vector<8x1xf32>
      %cst_29 = arith.constant 9.99999974E-6 : f32
      %70 = vector.broadcast %cst_29 : f32 to vector<8x1xf32>
      %71 = arith.addf %69, %70 : vector<8x1xf32>
      %72 = math.rsqrt %71 : vector<8x1xf32>
      %73 = vector.broadcast %72 : vector<8x1xf32> to vector<8x128xf32>
      %74 = arith.mulf %64, %73 : vector<8x128xf32>
      %75 = arith.mulf %74, %17 : vector<8x128xf32>
      %76 = arith.addf %75, %20 : vector<8x128xf32>
      %77 = arith.truncf %76 : vector<8x128xf32> to vector<8x128xbf16>
      %cst_30 = arith.constant dense<0.000000e+00> : vector<8x128xf32>
      %78 = tpu.matmul %77, %28, %cst_30 {dimension_numbers = #tpu.dot_dimension_numbers<[1], [0], [0], [1], [0, 0, 1, 1], [], []>} : vector<8x128xbf16>, vector<128x128xbf16>, vector<8x128xf32> -> vector<8x128xf32>
      %79 = arith.addf %78, %23 : vector<8x128xf32>
      %cst_31 = arith.constant 5.000000e-01 : f32
      %80 = vector.broadcast %cst_31 : f32 to vector<8x128xf32>
      %81 = arith.mulf %80, %79 : vector<8x128xf32>
      %cst_32 = arith.constant 1.41421354 : f32
      %82 = vector.broadcast %cst_32 : f32 to vector<8x128xf32>
      %83 = arith.divf %79, %82 : vector<8x128xf32>
      %84 = math.erf %83 : vector<8x128xf32>
      %cst_33 = arith.constant 1.000000e+00 : f32
      %85 = vector.broadcast %cst_33 : f32 to vector<8x128xf32>
      %86 = arith.addf %85, %84 : vector<8x128xf32>
      %87 = arith.mulf %81, %86 : vector<8x128xf32>
      %88 = arith.addf %58, %87 : vector<8x128xf32>
      %cst_34 = arith.constant dense<0.000000e+00> : vector<8xf32>
      %89 = vector.multi_reduction <add>, %88, %cst_34 [1] : vector<8x128xf32> to vector<8xf32>
      %90 = vector.shape_cast %89 : vector<8xf32> to vector<8x1xf32>
      %cst_35 = arith.constant 1.280000e+02 : f32
      %91 = vector.broadcast %cst_35 : f32 to vector<8x1xf32>
      %92 = arith.divf %90, %91 : vector<8x1xf32>
      %93 = vector.broadcast %92 : vector<8x1xf32> to vector<8x128xf32>
      %94 = arith.subf %88, %93 : vector<8x128xf32>
      %95 = arith.mulf %94, %94 : vector<8x128xf32>
      %cst_36 = arith.constant dense<0.000000e+00> : vector<8xf32>
      %96 = vector.multi_reduction <add>, %95, %cst_36 [1] : vector<8x128xf32> to vector<8xf32>
      %97 = vector.shape_cast %96 : vector<8xf32> to vector<8x1xf32>
      %cst_37 = arith.constant 1.280000e+02 : f32
      %98 = vector.broadcast %cst_37 : f32 to vector<8x1xf32>
      %99 = arith.divf %97, %98 : vector<8x1xf32>
      %cst_38 = arith.constant 9.99999974E-6 : f32
      %100 = vector.broadcast %cst_38 : f32 to vector<8x1xf32>
      %101 = arith.addf %99, %100 : vector<8x1xf32>
      %102 = math.rsqrt %101 : vector<8x1xf32>
      %103 = vector.broadcast %102 : vector<8x1xf32> to vector<8x128xf32>
      %104 = arith.mulf %94, %103 : vector<8x128xf32>
      %105 = arith.mulf %104, %17 : vector<8x128xf32>
      %106 = arith.addf %105, %20 : vector<8x128xf32>
      %107 = arith.truncf %106 : vector<8x128xf32> to vector<8x128xbf16>
      %cst_39 = arith.constant dense<0.000000e+00> : vector<8x128xf32>
      %108 = tpu.matmul %107, %28, %cst_39 {dimension_numbers = #tpu.dot_dimension_numbers<[1], [0], [0], [1], [0, 0, 1, 1], [], []>} : vector<8x128xbf16>, vector<128x128xbf16>, vector<8x128xf32> -> vector<8x128xf32>
      %109 = arith.addf %108, %23 : vector<8x128xf32>
      %cst_40 = arith.constant 5.000000e-01 : f32
      %110 = vector.broadcast %cst_40 : f32 to vector<8x128xf32>
      %111 = arith.mulf %110, %109 : vector<8x128xf32>
      %cst_41 = arith.constant 1.41421354 : f32
      %112 = vector.broadcast %cst_41 : f32 to vector<8x128xf32>
      %113 = arith.divf %109, %112 : vector<8x128xf32>
      %114 = math.erf %113 : vector<8x128xf32>
      %cst_42 = arith.constant 1.000000e+00 : f32
      %115 = vector.broadcast %cst_42 : f32 to vector<8x128xf32>
      %116 = arith.addf %115, %114 : vector<8x128xf32>
      %117 = arith.mulf %111, %116 : vector<8x128xf32>
      %118 = arith.addf %88, %117 : vector<8x128xf32>
      %c0_43 = arith.constant 0 : index
      %c0_44 = arith.constant 0 : index
      %119 = vector.load %arg6[%c0_43, %c0_44] : memref<128x128xf32, #tpu.memory_space<vmem>>, vector<128x128xf32>
      %cst_45 = arith.constant dense<0.000000e+00> : vector<8x128xf32>
      %120 = tpu.matmul %118, %119, %cst_45 {dimension_numbers = #tpu.dot_dimension_numbers<[1], [0], [0], [1], [0, 0, 1, 1], [], []>} : vector<8x128xf32>, vector<128x128xf32>, vector<8x128xf32> -> vector<8x128xf32>
      %121 = vector.broadcast %24 : vector<1x128xf32> to vector<8x128xf32>
      %122 = arith.addf %120, %121 : vector<8x128xf32>
      %123 = vector.extract_strided_slice %122 {offsets = [0, 0], sizes = [8, 64], strides = [1, 1]} : vector<8x128xf32> to vector<8x64xf32>
      %124 = vector.extract_strided_slice %122 {offsets = [0, 64], sizes = [8, 64], strides = [1, 1]} : vector<8x128xf32> to vector<8x64xf32>
      %c0_46 = arith.constant 0 : index
      %c0_47 = arith.constant 0 : index
      %125 = vector.load %arg3[%c0_46, %c0_47] : memref<8x64xf32, #tpu.memory_space<vmem>>, vector<8x64xf32>
      %cst_48 = arith.constant 5.000000e-01 : f32
      %126 = vector.broadcast %cst_48 : f32 to vector<8x64xf32>
      %127 = arith.mulf %126, %124 : vector<8x64xf32>
      %128 = math.exp %127 : vector<8x64xf32>
      %129 = arith.mulf %125, %128 : vector<8x64xf32>
      %130 = arith.addf %129, %123 : vector<8x64xf32>
      %c0_49 = arith.constant 0 : index
      %c0_50 = arith.constant 0 : index
      %131 = vector.load %arg8[%c0_49, %c0_50] : memref<8x192xf32, #tpu.memory_space<vmem>>, vector<8x128xf32>
      tpu.vector_store %arg8[%c0_49, %c0_50], %122 {strides = array<i32>} : memref<8x192xf32, #tpu.memory_space<vmem>>, vector<8x128xf32>,
      %c0_51 = arith.constant 0 : index
      %c128 = arith.constant 128 : index
      %132 = vector.load %arg8[%c0_51, %c128] : memref<8x192xf32, #tpu.memory_space<vmem>>, vector<8x64xf32>
      tpu.vector_store %arg8[%c0_51, %c128], %130 {strides = array<i32>} : memref<8x192xf32, #tpu.memory_space<vmem>>, vector<8x64xf32>,
    } else {
    }
    return
  }
  func.func @transform_0(%arg0: i32, %arg1: i32) -> (i32, i32) {
    %c0_i32 = arith.constant 0 : i32
    return %arg0, %arg1 : i32, i32
  }
  func.func @transform_1(%arg0: i32, %arg1: i32) -> (i32, i32) {
    %c0_i32 = arith.constant 0 : i32
    %c0_i32_0 = arith.constant 0 : i32
    return %arg0, %c0_i32 : i32, i32
  }
  func.func @transform_2(%arg0: i32, %arg1: i32) -> (i32, i32) {
    %c0_i32 = arith.constant 0 : i32
    %c0_i32_0 = arith.constant 0 : i32
    return %arg1, %c0_i32 : i32, i32
  }
  func.func @transform_3(%arg0: i32, %arg1: i32) -> (i32, i32) {
    %c0_i32 = arith.constant 0 : i32
    %c0_i32_0 = arith.constant 0 : i32
    %c0_i32_1 = arith.constant 0 : i32
    return %c0_i32, %c0_i32_0 : i32, i32
  }
  func.func @transform_4(%arg0: i32, %arg1: i32) -> (i32, i32) {
    %c0_i32 = arith.constant 0 : i32
    %c0_i32_0 = arith.constant 0 : i32
    %c0_i32_1 = arith.constant 0 : i32
    return %c0_i32, %c0_i32_0 : i32, i32
  }
  func.func @transform_5(%arg0: i32, %arg1: i32) -> (i32, i32) {
    %c0_i32 = arith.constant 0 : i32
    %c0_i32_0 = arith.constant 0 : i32
    %c0_i32_1 = arith.constant 0 : i32
    return %c0_i32, %c0_i32_0 : i32, i32
  }
  func.func @transform_6(%arg0: i32, %arg1: i32) -> (i32, i32) {
    %c0_i32 = arith.constant 0 : i32
    %c0_i32_0 = arith.constant 0 : i32
    return %arg0, %c0_i32 : i32, i32
  }
}

</mosaic_0001>

<bundles_post_ra>
// kernel: tpu_custom_call.1
= control target key start
LH: loop header
LB: loop body
LE: loop exit
PB: predicated region body
PF: predicated region fallthrough
CT: control target
= control target key end

     0   :  { %11 = vsyncpa [#allocation4], 0  ;;  %s1778_s0 = inlined_call_operand.hbm [shape: f32[8,784], index: 0, kind: input, shape index: {}]   ;;  %s1779_s1 = inlined_call_operand.hbm [shape: f32[8,64], index: 1, kind: input, shape index: {}]   ;;  %s1780_s2 = inlined_call_operand.hbm [shape: bf16[784,128], index: 2, kind: input, shape index: {}]   ;;  %s1781_s3 = inlined_call_operand.hbm [shape: bf16[128,128], index: 3, kind: input, shape index: {}]   ;;  %s1782_s4 = inlined_call_operand.hbm [shape: f32[128,128], index: 4, kind: input, shape index: {}]   ;;  %s1783_s5 = inlined_call_operand.vmem [shape: f32[8,128], index: 5, kind: input, shape index: {}]   ;;  %s1784_s6 = inlined_call_operand.hbm [shape: f32[8,192], index: 6, kind: output, shape index: {}]  }
   0x1   :  { %12 = vsyncpa [#allocation7], 0 }
   0x2   :  { %13 = vsyncpa [#allocation10], 0 }
   0x3   :  { %14 = vsyncpa [#allocation5], 0  ;;  %s1574_s21 = smov [#allocation6]   ;;  %s1434_s25 = scalar_lea.hbm %s1779_s1, 128 }
   0x4   :  { %s31_s22 = sshll.u32 %s1574_s21, 4  ;;  %p1435_p0 = scmp.ne.s32.totalorder %s1779_s1, %s1434_s25  ;;  %s32_s22 = int_to_ptr.vmem [resolvable:$true] %s31_s22 }
   0x5   :  { %p1438_p1 = scmp.lt.u32.totalorder %s1434_s25, %s1779_s1 }
   0x7   :  { %p1440_p2 = pnand %p1438_p1, %p1435_p0 }
   0x9   :  { %1443 = shalt.err (!%p1440_p2)
}
   0xa   :  { %s1444_s30 = scalar_lea.vmem %s32_s22, 128  ;;  %p1449_p4 = scmp.lt.s32.totalorder %s32_s22, %s32_s22 }
   0xb   :  { %p1445_p3 = scmp.ne.s32.totalorder %s32_s22, %s1444_s30  ;;  %p1450_p5 = scmp.lt.s32.totalorder %s1444_s30, %s1444_s30 }
   0xd   :  { %p1451_p6 = por %p1450_p5, %p1449_p4 }
   0xf   :  { %p1452_p7 = pnand %p1451_p6, %p1445_p3 }
  0x11   :  { %1455 = shalt.err (!%p1452_p7)
}
  0x12   :  { %34 = dma.hbm_to_vmem [thread:$0]  %s1779_s1, 128, %s32_s22, [#allocation7]  }
  0x13   :  { %s1575_s9 = smov [#allocation9]   ;;  %s1576_s11 = smov [#allocation3]  }
  0x14   :  { %s52_s10 = sshll.u32 %s1575_s9, 4  ;;  %s21_s12 = sshll.u32 %s1576_s11, 4  ;;  %s53_s10 = int_to_ptr.vmem [resolvable:$true] %s52_s10  ;;  %s22_s12 = int_to_ptr.vmem [resolvable:$true] %s21_s12 }
  0x15   :  { %s1456_s15 = scalar_lea.hbm %s1781_s3, 1024 }
  0x16   :  { %p1457_p8 = scmp.ne.s32.totalorder %s1781_s3, %s1456_s15  ;;  %p1460_p9 = scmp.lt.u32.totalorder %s1456_s15, %s1781_s3 }
  0x18   :  { %p1462_p10 = pnand %p1460_p9, %p1457_p8 }
  0x1a   :  { %1465 = shalt.err (!%p1462_p10)
}
  0x1b   :  { %s1466_s1 = scalar_lea.vmem %s53_s10, 1024  ;;  %p1471_p12 = scmp.lt.s32.totalorder %s53_s10, %s53_s10 }
  0x1c   :  { %p1467_p11 = scmp.ne.s32.totalorder %s53_s10, %s1466_s1  ;;  %p1472_p13 = scmp.lt.s32.totalorder %s1466_s1, %s1466_s1 }
  0x1e   :  { %p1473_p0 = por %p1472_p13, %p1471_p12 }
  0x20   :  { %p1474_p1 = pnand %p1473_p0, %p1467_p11 }
  0x22   :  { %1477 = shalt.err (!%p1474_p1)
}
  0x23   :  { %s1577_s20 = smov 64   ;;  %s1578_s21 = smov 4  }
  0x24   :  { %58 = dma.hbm_to_vmem [thread:$0]  %s1781_s3, 1024, %s53_s10, [#allocation10], %s1577_s20, %s1577_s20, %s1578_s21  }
  0x25   :  { %s1478_s26 = scalar_lea.hbm %s1778_s0, 896 }
  0x26   :  { %p1479_p2 = scmp.ne.s32.totalorder %s1778_s0, %s1478_s26  ;;  %p1482_p3 = scmp.lt.u32.totalorder %s1478_s26, %s1778_s0 }
  0x28   :  { %p1484_p4 = pnand %p1482_p3, %p1479_p2 }
  0x2a   :  { %1487 = shalt.err (!%p1484_p4)
}
  0x2b   :  { %s1488_s7 = scalar_lea.vmem %s22_s12, 896  ;;  %p1493_p6 = scmp.lt.s32.totalorder %s22_s12, %s22_s12 }
  0x2c   :  { %p1489_p5 = scmp.ne.s32.totalorder %s22_s12, %s1488_s7  ;;  %p1494_p7 = scmp.lt.s32.totalorder %s1488_s7, %s1488_s7 }
  0x2e   :  { %p1495_p8 = por %p1494_p7, %p1493_p6 }
  0x30   :  { %p1496_p9 = pnand %p1495_p8, %p1489_p5 }
  0x32   :  { %1499 = shalt.err (!%p1496_p9)
}
  0x33   :  { %24 = dma.hbm_to_vmem [thread:$0]  %s1778_s0, 896, %s22_s12, [#allocation4]  }
  0x34   :  { %s1579_s9 = smov [#allocation8]   ;;  %s1580_s11 = smov [#allocation11]  }
  0x35   :  { %s40_s10 = sshll.u32 %s1579_s9, 4  ;;  %s64_s13 = sshll.u32 %s1580_s11, 4  ;;  %s41_s10 = int_to_ptr.vmem [resolvable:$true] %s40_s10  ;;  %s65_s13 = int_to_ptr.vmem [resolvable:$true] %s64_s13 }
  0x36   :  { %s1500_s16 = scalar_lea.hbm %s1780_s2, 6272 }
  0x37   :  { %p1501_p10 = scmp.ne.s32.totalorder %s1780_s2, %s1500_s16  ;;  %p1504_p11 = scmp.lt.u32.totalorder %s1500_s16, %s1780_s2 }
  0x39   :  { %p1506_p12 = pnand %p1504_p11, %p1501_p10 }
  0x3b   :  { %1509 = shalt.err (!%p1506_p12)
}
  0x3c   :  { %s1510_s0 = scalar_lea.vmem %s41_s10, 6272  ;;  %p1515_p0 = scmp.lt.s32.totalorder %s41_s10, %s41_s10 }
  0x3d   :  { %p1511_p13 = scmp.ne.s32.totalorder %s41_s10, %s1510_s0  ;;  %p1516_p1 = scmp.lt.s32.totalorder %s1510_s0, %s1510_s0 }
  0x3f   :  { %p1517_p2 = por %p1516_p1, %p1515_p0 }
  0x41   :  { %p1518_p3 = pnand %p1517_p2, %p1511_p13 }
  0x43   :  { %1521 = shalt.err (!%p1518_p3)
}
  0x44   :  { %46 = dma.hbm_to_vmem [thread:$0]  %s1780_s2, 6272, %s41_s10, [#allocation7], %s1577_s20, %s1577_s20, %s1578_s21  }
  0x45   :  { %s1522_s25 = scalar_lea.hbm %s1782_s4, 2048 }
  0x46   :  { %p1523_p4 = scmp.ne.s32.totalorder %s1782_s4, %s1522_s25  ;;  %p1526_p5 = scmp.lt.u32.totalorder %s1522_s25, %s1782_s4 }
  0x48   :  { %p1528_p6 = pnand %p1526_p5, %p1523_p4 }
  0x4a   :  { %1531 = shalt.err (!%p1528_p6)
}
  0x4b   :  { %s1532_s30 = scalar_lea.vmem %s65_s13, 2048  ;;  %p1537_p8 = scmp.lt.s32.totalorder %s65_s13, %s65_s13 }
  0x4c   :  { %p1533_p7 = scmp.ne.s32.totalorder %s65_s13, %s1532_s30  ;;  %p1538_p9 = scmp.lt.s32.totalorder %s1532_s30, %s1532_s30 }
  0x4e   :  { %p1539_p10 = por %p1538_p9, %p1537_p8 }
  0x50   :  { %p1540_p11 = pnand %p1539_p10, %p1533_p7 }
  0x52   :  { %1543 = shalt.err (!%p1540_p11)
}
  0x53   :  { %s1581_s2 = smov 128   ;;  %s1582_s21 = smov 8  }
  0x54   :  { %70 = dma.hbm_to_vmem [thread:$0]  %s1782_s4, 2048, %s65_s13, [#allocation10], %s1581_s2, %s1581_s2, %s1582_s21  }
  0x55   :  { %1566 = dma.done.wait [#allocation4], 896  }
  0x56   :  { %1567 = vsyncadd [#allocation4], 4294966400 }
  0x57   :  { %1568 = dma.done.wait [#allocation7], 6400  }
  0x58   :  { %1569 = vsyncadd [#allocation7], 4294960896 }
  0x59   :  { %1570 = dma.done.wait [#allocation10], 3072  }
  0x5a   :  { %1571 = vsyncadd [#allocation10], 4294964224  ;;  %v1363_v0 = vld [vmem:[#allocation8 + $0x40] sm:$0xff]   ;;  %v1367_v4 = vld [vmem:[#allocation8 + $0x48] sm:$0xff]   ;;  %v1583_v41 = vmov 0.0   ;;  %vm1584_vm0 = vmmov 0  }
  0x5b   :  { %v1364_v1 = vld [vmem:[#allocation8 + $0xc0] sm:$0xff]   ;;  %1113 = vmatprep.subr.bf16.mxu0 %v1363_v0  ;;  %v1368_v5 = vld [vmem:[#allocation8 + $0xc8] sm:$0xff]   ;;  %v1371_v8 = vld [vmem:[#allocation8 + $0x50] sm:$0xff]   ;;  %vm501_vm1 = vcmask 130048   ;;  %vm1036_vm2 = vcmask 523264  }
  0x5c   :  { %v1365_v2 = vld [vmem:[#allocation8] sm:$0xff]   ;;  %1135 = vmatprep.subr.bf16.mxu1 %v1364_v1  ;;  %v1369_v6 = vld [vmem:[#allocation8 + $0x8] sm:$0xff]   ;;  %v1372_v9 = vld [vmem:[#allocation8 + $0xd0] sm:$0xff]  }
  0x5d   :  { %v1366_v3 = vld [vmem:[#allocation8 + $0x80] sm:$0xff]   ;;  %1114 = vmatpush3.bf16.msra.mxu0 %v1365_v2  ;;  %v1370_v7 = vld [vmem:[#allocation8 + $0x88] sm:$0xff]   ;;  %v1373_v10 = vld [vmem:[#allocation8 + $0x10] sm:$0xff]  }
  0x5e   :  { %1136 = vmatpush3.bf16.msra.mxu1 %v1366_v3  ;;  %1115 = vmatprep.subr.bf16.mxu0 %v1367_v4  ;;  %v1374_v11 = vld [vmem:[#allocation8 + $0x90] sm:$0xff]   ;;  %v1375_v12 = vld [vmem:[#allocation8 + $0x58] sm:$0xff]   ;;  %v1379_v16 = vld [vmem:[#allocation8 + $0x60] sm:$0xff]  }
  0x5f   :  { %1137 = vmatprep.subr.bf16.mxu1 %v1368_v5  ;;  %v1376_v13 = vld [vmem:[#allocation8 + $0xd8] sm:$0xff]   ;;  %v1380_v17 = vld [vmem:[#allocation8 + $0xe0] sm:$0xff]   ;;  %v1383_v20 = vld [vmem:[#allocation8 + $0x68] sm:$0xff]  }
  0x60   :  { %v1377_v14 = vld [vmem:[#allocation8 + $0x18] sm:$0xff]   ;;  %v1381_v18 = vld [vmem:[#allocation8 + $0x20] sm:$0xff]   ;;  %v1384_v21 = vld [vmem:[#allocation8 + $0xe8] sm:$0xff]  }
  0x61   :  { %1116 = vmatpush3.bf16.msra.mxu0 %v1369_v6  ;;  %v1378_v15 = vld [vmem:[#allocation8 + $0x98] sm:$0xff]   ;;  %v1382_v19 = vld [vmem:[#allocation8 + $0xa0] sm:$0xff]   ;;  %v1385_v22 = vld [vmem:[#allocation8 + $0x28] sm:$0xff]  }
  0x62   :  { %1138 = vmatpush3.bf16.msra.mxu1 %v1370_v7  ;;  %1117 = vmatprep.subr.bf16.mxu0 %v1371_v8  ;;  %v1386_v23 = vld [vmem:[#allocation8 + $0xa8] sm:$0xff]   ;;  %v1387_v24 = vld [vmem:[#allocation8 + $0x70] sm:$0xff]   ;;  %v1391_v28 = vld [vmem:[#allocation8 + $0x78] sm:$0xff]  }
  0x63   :  { %1139 = vmatprep.subr.bf16.mxu1 %v1372_v9  ;;  %v1388_v25 = vld [vmem:[#allocation8 + $0xf0] sm:$0xff]   ;;  %v1392_v29 = vld [vmem:[#allocation8 + $0xf8] sm:$0xff]   ;;  %v96_v32 = vld [vmem:[#allocation3 + $0x8] sm:$0xff] }
  0x64   :  { %v1389_v26 = vld [vmem:[#allocation8 + $0x30] sm:$0xff]   ;;  %v1393_v30 = vld [vmem:[#allocation8 + $0x38] sm:$0xff]   ;;  %v95_v34 = vld [vmem:[#allocation3] sm:$0xff]  ;;  %v103_v35 = vpack.c.bf16 %v96_v32, %v96_v32 }
  0x65   :  { %1118 = vmatpush3.bf16.msra.mxu0 %v1373_v10  ;;  %v1390_v27 = vld [vmem:[#allocation8 + $0xb0] sm:$0xff]   ;;  %v1394_v31 = vld [vmem:[#allocation8 + $0xb8] sm:$0xff]   ;;  %v102_v37 = vpack.c.bf16 %v95_v34, %v95_v34  ;;  %v1395_v40 = vld [vmem:[#allocation8 + $0x140] sm:$0xff]  }
  0x66   :  { %1140 = vmatpush3.bf16.msra.mxu1 %v1374_v11  ;;  %1119 = vmatprep.subr.bf16.mxu0 %v1375_v12  ;;  %v98_v33 = vld [vmem:[#allocation3 + $0x18] sm:$0xff]  ;;  %v97_v38 = vld [vmem:[#allocation3 + $0x10] sm:$0xff]  ;;  %v1396_v42 = vld [vmem:[#allocation8 + $0x100] sm:$0xff]  }
  0x67   :  { %1141 = vmatprep.subr.bf16.mxu1 %v1376_v13  ;;  %v105_v36 = vpack.c.bf16 %v98_v33, %v98_v33  ;;  %v104_v39 = vpack.c.bf16 %v97_v38, %v97_v38  ;;  %537 = vmatprep.mubr.bf16.mxu0 %v103_v35  ;;  %v1397_v43 = vld [vmem:[#allocation8 + $0x148] sm:$0xff]   ;;  %v1399_v45 = vld [vmem:[#allocation8 + $0x150] sm:$0xff]   ;;  %v1401_v47 = vld [vmem:[#allocation8 + $0x158] sm:$0xff]  }
  0x68   :  { %v1398_v44 = vld [vmem:[#allocation8 + $0x108] sm:$0xff]   ;;  %v1400_v46 = vld [vmem:[#allocation8 + $0x110] sm:$0xff]   ;;  %v1402_v48 = vld [vmem:[#allocation8 + $0x118] sm:$0xff]  }
  0x69   :  { %1120 = vmatpush3.bf16.msra.mxu0 %v1377_v14  ;;  %577 = vmatprep.mubr.bf16.mxu1 %v105_v36  ;;  %v1403_v49 = vld [vmem:[#allocation8 + $0x160] sm:$0xff]   ;;  %v1405_v51 = vld [vmem:[#allocation8 + $0x168] sm:$0xff]   ;;  %v101_v55 = vld [vmem:[#allocation3 + $0x30] sm:$0xff] }
  0x6a   :  { %1142 = vmatpush3.bf16.msra.mxu1 %v1378_v15  ;;  %1121 = vmatprep.subr.bf16.mxu0 %v1379_v16  ;;  %v1404_v50 = vld [vmem:[#allocation8 + $0x120] sm:$0xff]   ;;  %v100_v53 = vld [vmem:[#allocation3 + $0x28] sm:$0xff]  ;;  %v108_v57 = vpack.c.bf16 %v101_v55, %v101_v55  ;;  %v1407_v58 = vld [vmem:[#allocation8 + $0x170] sm:$0xff]   ;;  %v671_v15 = vlaneseq }
  0x6b   :  { %1143 = vmatprep.subr.bf16.mxu1 %v1380_v17  ;;  %v1411_v52 = vld [vmem:[#allocation8 + $0x180] sm:$0xff]   ;;  %v107_v54 = vpack.c.bf16 %v100_v53, %v100_v53  ;;  %v1406_v56 = vld [vmem:[#allocation8 + $0x128] sm:$0xff]   ;;  %v1408_v59 = vld [vmem:[#allocation8 + $0x130] sm:$0xff]  }
  0x6c   :  { %v1409_v60 = vld [vmem:[#allocation8 + $0x178] sm:$0xff]   ;;  %v99_v62 = vld [vmem:[#allocation3 + $0x20] sm:$0xff]  ;;  %v1697_v16 = vshrl.u32 %v671_v15, 7  ;;  %v1416_v36 = vld [vmem:[#allocation9 + $0x20] sm:$0xff]  }
  0x6d   :  { %1122 = vmatpush3.bf16.msra.mxu0 %v1381_v18  ;;  %v1410_v61 = vld [vmem:[#allocation8 + $0x138] sm:$0xff]   ;;  %v106_v63 = vpack.c.bf16 %v99_v62, %v99_v62  ;;  %v1415_v35 = vld [vmem:[#allocation9 + $0x18] sm:$0xff]  }
  0x6e   :  { %1144 = vmatpush3.bf16.msra.mxu1 %v1382_v19  ;;  %1123 = vmatprep.subr.bf16.mxu0 %v1383_v20  ;;  %v686_v18 = vsub.s32 0, %v1697_v16  ;;  %v1703_v20 = vld [vmem:[%s1783_s5] sm:$0xff]  ;;  %v1414_v34 = vld [vmem:[#allocation9 + $0x10] sm:$0xff]   ;;  %v681_v53 = vsub.s32 3, %v1697_v16  ;;  %s1586_s5 = smov [#allocation12]  }
  0x6f   :  { %1145 = vmatprep.subr.bf16.mxu1 %v1384_v21  ;;  %v1418_v38 = vld [vmem:[#allocation9 + $0x30] sm:$0xff]   ;;  %s1044_s9 = sshll.u32 %s1586_s5, 4  ;;  %s1045_s9 = int_to_ptr.vmem [resolvable:$true] %s1044_s9 }
  0x70   :  { %s1544_s10 = scalar_lea.vmem %s1045_s9, 256  ;;  %p1549_p13 = scmp.lt.s32.totalorder %s1045_s9, %s1045_s9 }
  0x71   :  { %1124 = vmatpush3.bf16.msra.mxu0 %v1385_v22  ;;  %p1545_p12 = scmp.ne.s32.totalorder %s1045_s9, %s1544_s10  ;;  %p1550_p0 = scmp.lt.s32.totalorder %s1544_s10, %s1544_s10 }
  0x72   :  { %1146 = vmatpush3.bf16.msra.mxu1 %v1386_v23  ;;  %1125 = vmatprep.subr.bf16.mxu0 %v1387_v24 }
  0x73   :  { %1147 = vmatprep.subr.bf16.mxu1 %v1388_v25  ;;  %v687_v25 = vrot.slane %v1703_v20, %v686_v18  ;;  %p1551_p1 = por %p1550_p0, %p1549_p13 }
  0x75   :  { %1126 = vmatpush3.bf16.msra.mxu0 %v1389_v26  ;;  %p1552_p2 = pnand %p1551_p1, %p1545_p12 }
  0x76   :  { %1148 = vmatpush3.bf16.msra.mxu1 %v1390_v27  ;;  %1127 = vmatprep.subr.bf16.mxu0 %v1391_v28  ;;  %v1412_v28 = vld [vmem:[#allocation9] sm:$0xff]  }
  0x77   :  { %1149 = vmatprep.subr.bf16.mxu1 %v1392_v29  ;;  %v1413_v29 = vld [vmem:[#allocation9 + $0x8] sm:$0xff]  }
  0x79   :  { %1128 = vmatpush3.bf16.msra.mxu0 %v1393_v30 }
  0x7a   :  { %1150 = vmatpush3.bf16.msra.mxu1 %v1394_v31  ;;  %1157 = vmatprep.subr.bf16.mxu0 %v1395_v40 }
  0x7b   :  { %1225 = vmatprep.subr.bf16.mxu1 %v1583_v41 }
  0x7c   :  { %538 = vmatmul.mubr.bf16.vlgmr.msra.gmra.mrb[0].mxu0 %v102_v37  ;;  %v1417_v37 = vld [vmem:[#allocation9 + $0x28] sm:$0xff]  }
  0x7d   :  { %578 = vmatmul.mubr.bf16.vlgmr.msra.gmra.mrb[0].mxu1 %v104_v39  ;;  %1158 = vmatpush3.bf16.msra.mxu0 %v1396_v42  ;;  %v1419_v39 = vld [vmem:[#allocation9 + $0x38] sm:$0xff]  }
  0x7e   :  { %1227 = vmatprep.mubr.msk.bf16.mxu1 %vm1584_vm0, %v1583_v41  ;;  %1159 = vmatprep.subr.bf16.mxu0 %v1397_v43 }
  0x7f   :  { %1226 = vmatpush3.bf16.msra.mxu1 %v1411_v52  ;;  %617 = vmatprep.mubr.bf16.mxu0 %v107_v54  ;;  %v1746_v54 = vrot.slane %v1703_v20, %v681_v53 }
  0x80   :  { %1231 = vmatprep.subr.bf16.mxu1 %v1583_v41 }
  0x81   :  { %1160 = vmatpush3.bf16.msra.mxu0 %v1398_v44  ;;  %v673_v44 = vsub.s32 1, %v1697_v16 }
  0x82   :  { %1161 = vmatprep.subr.bf16.mxu0 %v1399_v45  ;;  %v677_v45 = vsub.s32 2, %v1697_v16 }
  0x85   :  { %1162 = vmatpush3.bf16.msra.mxu0 %v1400_v46  ;;  %1228 = vmatmul.mubr.msk.bf16.vlgmr.msra.gmra.mrb[4].mxu1 %vm501_vm1, %v108_v57  ;;  %v1728_v46 = vrot.slane %v1703_v20, %v673_v44 }
  0x86   :  { %1163 = vmatprep.subr.bf16.mxu0 %v1401_v47  ;;  %1247 = vmatprep.mubr.msk.bf16.mxu1 %vm1584_vm0, %v1583_v41 }
  0x87   :  { %1232 = vmatpush3.bf16.msra.mxu1 %v1412_v28 }
  0x88   :  { %1233 = vmatprep.subr.bf16.mxu1 %v1583_v41 }
  0x89   :  { %1164 = vmatpush3.bf16.msra.mxu0 %v1402_v48  ;;  %v1731_v48 = vrot.slane %v1703_v20, %v677_v45 }
  0x8a   :  { %1165 = vmatprep.subr.bf16.mxu0 %v1403_v49 }
  0x8b   :  { %1234 = vmatpush3.bf16.msra.mxu1 %v1413_v29 }
  0x8c   :  { %1235 = vmatprep.subr.bf16.mxu1 %v1583_v41 }
  0x8d   :  { %1166 = vmatpush3.bf16.msra.mxu0 %v1404_v50 }
  0x8e   :  { %1167 = vmatprep.subr.bf16.mxu0 %v1405_v51 }
  0x8f   :  { %1236 = vmatpush3.bf16.msra.mxu1 %v1414_v34 }
  0x90   :  { %1237 = vmatprep.subr.bf16.mxu1 %v1583_v41 }
  0x91   :  { %1168 = vmatpush3.bf16.msra.mxu0 %v1406_v56 }
  0x92   :  { %1169 = vmatprep.subr.bf16.mxu0 %v1407_v58 }
  0x93   :  { %1238 = vmatpush3.bf16.msra.mxu1 %v1415_v35 }
  0x94   :  { %1239 = vmatprep.subr.bf16.mxu1 %v1583_v41 }
  0x95   :  { %1170 = vmatpush3.bf16.msra.mxu0 %v1408_v59 }
  0x96   :  { %1171 = vmatprep.subr.bf16.mxu0 %v1409_v60 }
  0x97   :  { %1240 = vmatpush3.bf16.msra.mxu1 %v1416_v36 }
  0x98   :  { %1241 = vmatprep.subr.bf16.mxu1 %v1583_v41 }
  0x99   :  { %1172 = vmatpush3.bf16.msra.mxu0 %v1410_v61 }
  0x9a   :  { %1251 = vmatprep.subr.bf16.mxu0 %v1583_v41 }
  0x9b   :  { %1242 = vmatpush3.bf16.msra.mxu1 %v1417_v37 }
  0x9c   :  { %618 = vmatmul.mubr.bf16.vlgmr.msra.gmra.mrb[4].mxu0 %v106_v63  ;;  %1243 = vmatprep.subr.bf16.mxu1 %v1583_v41 }
  0x9d   :  { %1267 = vmatprep.mubr.msk.bf16.mxu0 %vm1584_vm0, %v1583_v41  ;;  %1252 = vmatpush3.bf16.msra.mxu0 %v1412_v28 }
  0x9e   :  { %1253 = vmatprep.subr.bf16.mxu0 %v1583_v41 }
  0x9f   :  { %1244 = vmatpush3.bf16.msra.mxu1 %v1418_v38 }
  0xa0   :  { %1245 = vmatprep.subr.bf16.mxu1 %v1583_v41 }
  0xa1   :  { %1254 = vmatpush3.bf16.msra.mxu0 %v1413_v29 }
  0xa2   :  { %1255 = vmatprep.subr.bf16.mxu0 %v1583_v41 }
  0xa3   :  { %1246 = vmatpush3.bf16.msra.mxu1 %v1419_v39 }
  0xa4   :  { %1271 = vmatprep.subr.bf16.mxu1 %v1583_v41 }
  0xa5   :  { %1256 = vmatpush3.bf16.msra.mxu0 %v1414_v34 }
  0xa6   :  { %1257 = vmatprep.subr.bf16.mxu0 %v1583_v41 }
  0xa9   :  { %1258 = vmatpush3.bf16.msra.mxu0 %v1415_v35 }
  0xaa   :  { %1259 = vmatprep.subr.bf16.mxu0 %v1583_v41 }
  0xad   :  { %1260 = vmatpush3.bf16.msra.mxu0 %v1416_v36 }
  0xae   :  { %1261 = vmatprep.subr.bf16.mxu0 %v1583_v41 }
  0xb1   :  { %1262 = vmatpush3.bf16.msra.mxu0 %v1417_v37 }
  0xb2   :  { %1263 = vmatprep.subr.bf16.mxu0 %v1583_v41 }
  0xb5   :  { %1264 = vmatpush3.bf16.msra.mxu0 %v1418_v38 }
  0xb6   :  { %1265 = vmatprep.subr.bf16.mxu0 %v1583_v41 }
  0xb9   :  { %1266 = vmatpush3.bf16.msra.mxu0 %v1419_v39 }
 0x14f   :  { %v1129_v0 = vpop.f32.mrb[0].mxu0 }
 0x150   :  { %v1151_v1 = vpop.f32.mrb[0].mxu1  ;;  %v1130_v2 = vpop.f32.mrb[1].mxu0 }
 0x151   :  { %v1152_v3 = vpop.f32.mrb[1].mxu1  ;;  %v1131_v4 = vadd.f32 %v1130_v2, %v1129_v0  ;;  %v1132_v6 = vpop.f32.mrb[2].mxu0 }
 0x152   :  { %v1153_v5 = vadd.f32 %v1152_v3, %v1151_v1  ;;  %v1154_v7 = vpop.f32.mrb[2].mxu1  ;;  %v1133_v8 = vpop.f32.mrb[3].mxu0 }
 0x153   :  { %v1155_v9 = vpop.f32.mrb[3].mxu1 }
 0x154   :  { %v580_v10 = vadd.f32 %v1153_v5, %v1131_v4 }
 0x158   :  { %v659_v11 = vpop.f32.mrb[4].mxu1 }
 0x159   :  { %v1229_v12 = vpop.f32.mrb[5].mxu1 }
 0x15a   :  { %v662_v13 = vpop.f32.mrb[6].mxu1 }
 0x15b   :  { %v1230_v14 = vpop.f32.mrb[7].mxu1 }
 0x16f   :  { %v1173_v17 = vpop.f32.mrb[4].mxu0 }
 0x170   :  { %v1174_v19 = vpop.f32.mrb[5].mxu0 }
 0x171   :  { %v1175_v21 = vadd.f32 %v1174_v19, %v1173_v17  ;;  %v1176_v22 = vpop.f32.mrb[6].mxu0 }
 0x172   :  { %v1177_v23 = vpop.f32.mrb[7].mxu0 }
 0x173   :  { %v620_v24 = vadd.f32 %v1175_v21, %v580_v10 }
 0x175   :  { %v660_v26 = vadd.f32 %v659_v11, %v620_v24 }
 0x177   :  { %v1706_v27 = vadd.f32 %v687_v25, %v660_v26 }
 0x179   :  { %705 = vadd.xlane.f32.xlu0 %v1706_v27 }
 0x206   :  { %v706_v30 = vpop.xlane.xlu0 %705 }
 0x207   :  { %v708_v31 = vmul.f32 0.0078125, %v706_v30  ;;  %v935_v30 = vld [vmem:[#allocation11] sm:$0xff] }
 0x209   :  { %v709_v32 = vsub.f32 %v1706_v27, %v708_v31  ;;  %v936_v31 = vld [vmem:[#allocation11 + $0x8] sm:$0xff] }
 0x20b   :  { %v710_v33 = vmul.f32 %v709_v32, %v709_v32 }
 0x20d   :  { %711 = vadd.xlane.f32.xlu0 %v710_v33  ;;  %v1585_v33 = vmov 0.0|0.0  }
 0x20e   :  { %1326 = vmatprep.subr.bf16.mxu0 %v1585_v33 }
 0x29a   :  { %v712_v40 = vpop.xlane.xlu0 %711 }
 0x29b   :  { %v713_v42 = vmul.f32 0.0078125, %v712_v40 }
 0x29d   :  { %v714_v43 = vadd.f32 1e-05, %v713_v42 }
 0x29f   :  { %1420 = vrsqrt.f32 %v714_v43 }
 0x2a9   :  { %v1421_v47 = vpop.eup %1420 }
 0x2aa   :  { %v716_v49 = vmul.f32 %v1421_v47, %v709_v32  ;;  %v937_v32 = vld [vmem:[#allocation11 + $0x10] sm:$0xff] }
 0x2ac   :  { %v717_v50 = vmul.f32 %v716_v49, %v1728_v46 }
 0x2ae   :  { %v718_v51 = vadd.f32 %v717_v50, %v1731_v48 }
 0x2b0   :  { %v719_v52 = vpack.c.bf16 %v718_v51, %v718_v51  ;;  %v941_v51 = vld [vmem:[#allocation11 + $0x30] sm:$0xff] }
 0x2b2   :  { %1248 = vmatmul.mubr.bf16.vlgmr.msra.gmra.mrb[8].mxu1 %v719_v52  ;;  %v942_v52 = vld [vmem:[#allocation11 + $0x38] sm:$0xff] }
 0x2b3   :  { %1272 = vmatpush3.bf16.msra.mxu1 %v1412_v28  ;;  %1287 = vmatprep.mubr.msk.bf16.mxu1 %vm1584_vm0, %v1583_v41  ;;  %v1336_v53 = vpack.c.bf16 %v942_v52, %v941_v51 }
 0x2b4   :  { %1273 = vmatprep.subr.bf16.mxu1 %v1583_v41 }
 0x2b7   :  { %1274 = vmatpush3.bf16.msra.mxu1 %v1413_v29 }
 0x2b8   :  { %1275 = vmatprep.subr.bf16.mxu1 %v1583_v41 }
 0x2bb   :  { %1276 = vmatpush3.bf16.msra.mxu1 %v1414_v34  ;;  %v1327_v34 = vpack.c.bf16 %v936_v31, %v935_v30 }
 0x2bc   :  { %1277 = vmatprep.subr.bf16.mxu1 %v1583_v41 }
 0x2bf   :  { %1278 = vmatpush3.bf16.msra.mxu1 %v1415_v35  ;;  %v938_v35 = vld [vmem:[#allocation11 + $0x18] sm:$0xff] }
 0x2c0   :  { %1279 = vmatprep.subr.bf16.mxu1 %v1583_v41 }
 0x2c3   :  { %1280 = vmatpush3.bf16.msra.mxu1 %v1416_v36  ;;  %v1330_v36 = vpack.c.bf16 %v938_v35, %v937_v32 }
 0x2c4   :  { %1281 = vmatprep.subr.bf16.mxu1 %v1583_v41 }
 0x2c7   :  { %1282 = vmatpush3.bf16.msra.mxu1 %v1417_v37  ;;  %v939_v37 = vld [vmem:[#allocation11 + $0x20] sm:$0xff] }
 0x2c8   :  { %1283 = vmatprep.subr.bf16.mxu1 %v1583_v41 }
 0x2cb   :  { %1284 = vmatpush3.bf16.msra.mxu1 %v1418_v38  ;;  %v940_v38 = vld [vmem:[#allocation11 + $0x28] sm:$0xff] }
 0x2cc   :  { %1285 = vmatprep.subr.bf16.mxu1 %v1583_v41 }
 0x2cf   :  { %1286 = vmatpush3.bf16.msra.mxu1 %v1419_v39  ;;  %v1333_v39 = vpack.c.bf16 %v940_v38, %v939_v37 }
 0x385   :  { %v802_v55 = vpop.f32.mrb[8].mxu1 }
 0x386   :  { %v803_v56 = vadd.f32 %v802_v55, %v1746_v54  ;;  %v1249_v57 = vpop.f32.mrb[9].mxu1  ;;  %v943_v55 = vld [vmem:[#allocation11 + $0x40] sm:$0xff] }
 0x387   :  { %v805_v58 = vpop.f32.mrb[10].mxu1 }
 0x388   :  { %v810_v59 = vmul.f32 0.70710677, %v803_v56  ;;  %v1250_v60 = vpop.f32.mrb[11].mxu1  ;;  %v808_v62 = vmul.f32 0.5, %v803_v56  ;;  %v944_v56 = vld [vmem:[#allocation11 + $0x48] sm:$0xff]  ;;  %v945_v58 = vld [vmem:[#allocation11 + $0x50] sm:$0xff] }
 0x389   :  { %v1339_v57 = vpack.c.bf16 %v944_v56, %v943_v55 }
 0x38a   :  { %1422 = verf.f32 %v810_v59  ;;  %v946_v59 = vld [vmem:[#allocation11 + $0x58] sm:$0xff] }
 0x38b   :  { %v1342_v60 = vpack.c.bf16 %v946_v59, %v945_v58 }
 0x394   :  { %v1423_v61 = vpop.eup %1422 }
 0x395   :  { %v812_v63 = vadd.f32 1.0, %v1423_v61  ;;  %v948_v61 = vld [vmem:[#allocation11 + $0x68] sm:$0xff] }
 0x397   :  { %v813_v0 = vmul.f32 %v812_v63, %v808_v62  ;;  %v949_v62 = vld [vmem:[#allocation11 + $0x70] sm:$0xff]  ;;  %v950_v63 = vld [vmem:[#allocation11 + $0x78] sm:$0xff] }
 0x399   :  { %v814_v1 = vadd.f32 %v813_v0, %v1706_v27  ;;  %v1348_v0 = vpack.c.bf16 %v950_v63, %v949_v62 }
 0x39b   :  { %815 = vadd.xlane.f32.xlu1 %v814_v1 }
 0x428   :  { %v816_v2 = vpop.xlane.xlu1 %815 }
 0x429   :  { %v817_v3 = vmul.f32 0.0078125, %v816_v2 }
 0x42b   :  { %v818_v4 = vsub.f32 %v814_v1, %v817_v3 }
 0x42d   :  { %v819_v5 = vmul.f32 %v818_v4, %v818_v4 }
 0x42f   :  { %820 = vadd.xlane.f32.xlu1 %v819_v5 }
 0x4bc   :  { %v821_v6 = vpop.xlane.xlu1 %820 }
 0x4bd   :  { %v822_v7 = vmul.f32 0.0078125, %v821_v6 }
 0x4bf   :  { %v823_v8 = vadd.f32 1e-05, %v822_v7 }
 0x4c1   :  { %1424 = vrsqrt.f32 %v823_v8 }
 0x4cb   :  { %v1425_v9 = vpop.eup %1424 }
 0x4cc   :  { %v825_v10 = vmul.f32 %v1425_v9, %v818_v4 }
 0x4ce   :  { %v826_v11 = vmul.f32 %v825_v10, %v1728_v46 }
 0x4d0   :  { %v827_v12 = vadd.f32 %v826_v11, %v1731_v48 }
 0x4d2   :  { %v828_v13 = vpack.c.bf16 %v827_v12, %v827_v12  ;;  %v953_v12 = vsub.s32 4, %v1697_v16 }
 0x4d4   :  { %1268 = vmatmul.mubr.bf16.vlgmr.msra.gmra.mrb[8].mxu0 %v828_v13  ;;  %v954_v13 = vrot.slane %v1703_v20, %v953_v12 }
 0x4d5   :  { %1323 = vmatprep.mubr.msk.f32.mxu0 %vm1584_vm0, %v1583_v41  ;;  %1328 = vmatpush3.bf16.msra.mxu0 %v1327_v34 }
 0x4d6   :  { %1329 = vmatprep.subr.bf16.mxu0 %v1585_v33 }
 0x4d9   :  { %1331 = vmatpush3.bf16.msra.mxu0 %v1330_v36 }
 0x4da   :  { %1332 = vmatprep.subr.bf16.mxu0 %v1585_v33 }
 0x4dd   :  { %1334 = vmatpush3.bf16.msra.mxu0 %v1333_v39 }
 0x4de   :  { %1335 = vmatprep.subr.bf16.mxu0 %v1585_v33 }
 0x4e1   :  { %1337 = vmatpush3.bf16.msra.mxu0 %v1336_v53 }
 0x4e2   :  { %1338 = vmatprep.subr.bf16.mxu0 %v1585_v33 }
 0x4e5   :  { %1340 = vmatpush3.bf16.msra.mxu0 %v1339_v57 }
 0x4e6   :  { %1341 = vmatprep.subr.bf16.mxu0 %v1585_v33 }
 0x4e9   :  { %1343 = vmatpush3.bf16.msra.mxu0 %v1342_v60 }
 0x4ea   :  { %1344 = vmatprep.subr.bf16.mxu0 %v1585_v33 }
 0x5a7   :  { %v863_v14 = vpop.f32.mrb[8].mxu0 }
 0x5a8   :  { %v864_v15 = vadd.f32 %v863_v14, %v1746_v54  ;;  %v1269_v17 = vpop.f32.mrb[9].mxu0 }
 0x5a9   :  { %v866_v18 = vpop.f32.mrb[10].mxu0 }
 0x5aa   :  { %v870_v19 = vmul.f32 0.70710677, %v864_v15  ;;  %v1270_v21 = vpop.f32.mrb[11].mxu0  ;;  %v869_v23 = vmul.f32 0.5, %v864_v15 }
 0x5ab   :  { %v1025_v21 = vld [vmem:[#allocation6] sm:$0xff] }
 0x5ac   :  { %1426 = verf.f32 %v870_v19 }
 0x5b6   :  { %v1427_v22 = vpop.eup %1426 }
 0x5b7   :  { %v872_v24 = vadd.f32 1.0, %v1427_v22 }
 0x5b9   :  { %v873_v25 = vmul.f32 %v872_v24, %v869_v23 }
 0x5bb   :  { %v1755_v26 = vadd.f32 %v873_v25, %v814_v1 }
 0x5bd   :  { %875 = vadd.xlane.f32.xlu0 %v1755_v26 }
 0x64a   :  { %v876_v27 = vpop.xlane.xlu0 %875 }
 0x64b   :  { %v877_v28 = vmul.f32 0.0078125, %v876_v27 }
 0x64d   :  { %v878_v41 = vsub.f32 %v1755_v26, %v877_v28 }
 0x64f   :  { %v879_v29 = vmul.f32 %v878_v41, %v878_v41 }
 0x651   :  { %880 = vadd.xlane.f32.xlu1 %v879_v29 }
 0x6de   :  { %v881_v40 = vpop.xlane.xlu1 %880 }
 0x6df   :  { %v882_v42 = vmul.f32 0.0078125, %v881_v40 }
 0x6e1   :  { %v883_v43 = vadd.f32 1e-05, %v882_v42 }
 0x6e3   :  { %1428 = vrsqrt.f32 %v883_v43 }
 0x6ed   :  { %v1429_v44 = vpop.eup %1428 }
 0x6ee   :  { %v885_v45 = vmul.f32 %v1429_v44, %v878_v41 }
 0x6f0   :  { %v886_v47 = vmul.f32 %v885_v45, %v1728_v46  ;;  %v947_v46 = vld [vmem:[#allocation11 + $0x60] sm:$0xff] }
 0x6f2   :  { %v887_v49 = vadd.f32 %v886_v47, %v1731_v48  ;;  %v1345_v48 = vpack.c.bf16 %v948_v61, %v947_v46 }
 0x6f4   :  { %v888_v50 = vpack.c.bf16 %v887_v49, %v887_v49  ;;  %1346 = vmatpush3.bf16.msra.mxu0 %v1345_v48 }
 0x6f5   :  { %1347 = vmatprep.subr.bf16.mxu0 %v1585_v33 }
 0x6f6   :  { %1288 = vmatmul.mubr.bf16.vlgmr.msra.gmra.mrb[12].mxu1 %v888_v50 }
 0x6f8   :  { %1349 = vmatpush3.bf16.msra.mxu0 %v1348_v0 }
 0x7c9   :  { %v923_v1 = vpop.f32.mrb[12].mxu1 }
 0x7ca   :  { %v924_v2 = vadd.f32 %v923_v1, %v1746_v54  ;;  %v1289_v3 = vpop.f32.mrb[13].mxu1 }
 0x7cb   :  { %v926_v4 = vpop.f32.mrb[14].mxu1 }
 0x7cc   :  { %v930_v5 = vmul.f32 0.70710677, %v924_v2  ;;  %v1290_v6 = vpop.f32.mrb[15].mxu1  ;;  %v929_v8 = vmul.f32 0.5, %v924_v2 }
 0x7ce   :  { %1430 = verf.f32 %v930_v5 }
 0x7d8   :  { %v1431_v7 = vpop.eup %1430 }
 0x7d9   :  { %v932_v9 = vadd.f32 1.0, %v1431_v7 }
 0x7db   :  { %v933_v10 = vmul.f32 %v932_v9, %v929_v8 }
 0x7dd   :  { %v934_v11 = vadd.f32 %v933_v10, %v1755_v26 }
 0x7df   :  { %1324 = vmatmul.mubr.f32.vlgmr.msra.gmra.mrb[12].mxu0 %v934_v11 }
 0x8b2   :  { %v1021_v14 = vpop.f32.mrb[12].mxu0 }
 0x8b3   :  { %v1022_v15 = vadd.f32 %v1021_v14, %v954_v13  ;;  %v1325_v17 = vpop.f32.mrb[13].mxu0 }
 0x8b5   :  { %v1026_v54 = vmul.f32 0.5, %v1022_v15  ;;  %1035 = vst [vmem:[#allocation12] sm:$0xff] %v1022_v15 }
 0x8b7   :  { %v1027_v18 = vmul.f32 1.442695, %v1026_v54 }
 0x8b9   :  { %1432 = vpow2.f32 %v1027_v18 }
 0x8c3   :  { %v1433_v19 = vpop.eup %1432 }
 0x8c4   :  { %1030 = vrot.lane.b32.xlu0 %v1433_v19, %s1577_s20 }
 0x936   :  { %v1031_v22 = vpop.permute.xlu0 %1030 }
 0x937   :  { %v1033_v23 = vmul.f32 %v1031_v22, %v1025_v21 }
 0x939   :  { %v1034_v24 = vadd.f32 %v1033_v23, %v1022_v15 }
 0x93b   :  { %1037 = vst.msk [vmem:[#allocation12 + $0x8] sm:$0xff] %vm1036_vm2, %v1034_v24 }
 0x93c   :  { %1555 = shalt.err (!%p1552_p2)
}
 0x93d   :  { %s1556_s20 = scalar_lea.hbm %s1784_s6, 256 }
 0x93e   :  { %p1557_p3 = scmp.ne.s32.totalorder %s1784_s6, %s1556_s20  ;;  %p1560_p4 = scmp.lt.u32.totalorder %s1556_s20, %s1784_s6 }
 0x940   :  { %p1562_p5 = pnand %p1560_p4, %p1557_p3 }
 0x942   :  { %1565 = shalt.err (!%p1562_p5)
}
 0x943   :  { %1047 = dma.vmem_to_hbm [thread:$0]  %s1045_s9, 256, %s1784_s6, [#allocation5]  }
 0x944   :  { %1572 = dma.done.wait [#allocation5], 256  }
 0x945   :  { %1573 = vsyncadd [#allocation5], 4294967040 }
 0x946   :  { %1051 = vsyncpa [#allocation4], 1 }
 0x947   :  { %1052 = vsyncpa [#allocation7], 1 }
 0x948   :  { %1053 = vsyncpa [#allocation10], 1 }
 0x949   :  { %1054 = vsyncpa [#allocation5], 1 }

</bundles_post_ra>
